<compile_context>
chip_gen: v6e
topology: v6e:2x2x1
jax: 0.10.0
libtpu: 0.0.40
codegen_flags: <defaults>
</compile_context>

<pallas_src>
import functools

import numpy as np
import jax
import jax.numpy as jnp
from jax.experimental import pallas as pl
from jax.experimental.pallas import tpu as pltpu

LANE = 128
SUBLANE = 8


def _round_up(x, m):
    return ((x + m - 1) // m) * m


def _mlp_kernel(x1_ref, x2_ref, *refs, num_layers):
    """Fused MLP for one batch tile.

    refs = [w0a, w0b, b0, (w_i, b_i) for i in 1..L-1, out_ref]
    """
    out_ref = refs[-1]
    p = refs[:-1]
    w0a, w0b, b0 = p[0], p[1], p[2]

    # Layer 0: concat([x1, x2]) @ W0 + b0 == x1 @ W0a + x2 @ W0b + b0.
    y = jnp.dot(x1_ref[...], w0a[...], preferred_element_type=jnp.float32)
    y = y + jnp.dot(x2_ref[...], w0b[...], preferred_element_type=jnp.float32)
    y = y + b0[...]

    if num_layers > 1:
        y = jnp.maximum(y, 0.0)            # ReLU (not last layer)
        idx = 3
        for li in range(1, num_layers):    # unrolled at trace time
            w, b = p[idx], p[idx + 1]
            idx += 2
            y = jnp.dot(y, w[...], preferred_element_type=jnp.float32) + b[...]
            if li != num_layers - 1:
                y = jnp.maximum(y, 0.0)

    # Last layer: sigmoid (exact; exp goes to the EUP slot).
    y = 1.0 / (1.0 + jnp.exp(-y))
    out_ref[...] = y.astype(out_ref.dtype)


def prepare_params(weights, biases, in_dim):
    """One-time parameter re-layout (outside the hot path).

    weights[i]: (dim_i, dim_{i+1}) with dim_0 = 2*in_dim (y = x @ W + b).
    biases[i]:  (dim_{i+1},).
    Pads every layer's output dim to a lane multiple and splits W0 so the
    concat never materializes.
    """
    num_layers = len(weights)
    out_dims = [int(w.shape[1]) for w in weights]
    pad_dims = [_round_up(d, LANE) for d in out_dims]

    w0 = weights[0]
    w0a = jnp.pad(w0[:in_dim], ((0, 0), (0, pad_dims[0] - out_dims[0])))
    w0b = jnp.pad(w0[in_dim:], ((0, 0), (0, pad_dims[0] - out_dims[0])))
    b0 = jnp.pad(biases[0].reshape(1, -1),
                 ((0, 0), (0, pad_dims[0] - out_dims[0])))
    flat = [w0a, w0b, b0]
    for li in range(1, num_layers):
        w = jnp.pad(weights[li],
                    ((0, pad_dims[li - 1] - out_dims[li - 1]),
                     (0, pad_dims[li] - out_dims[li])))
        bb = jnp.pad(biases[li].reshape(1, -1),
                     ((0, 0), (0, pad_dims[li] - out_dims[li])))
        flat += [w, bb]
    return tuple(flat), num_layers, out_dims[-1], pad_dims[-1]


@functools.partial(
    jax.jit,
    static_argnames=("num_layers", "out_dim", "out_pad_dim", "tile_b"))
def fc_composer_forward(x1, x2, flat_params, *, num_layers, out_dim,
                        out_pad_dim, tile_b=512):
    """Pallas implementation of Fully_Connected_Composer.forward."""
    B, in_dim = x1.shape

    # --- batch tiling (sublane-aligned, one or more independent tiles) ---
    TB = min(_round_up(tile_b, SUBLANE), _round_up(B, SUBLANE))
    B_pad = _round_up(B, TB)
    if B_pad != B:
        x1 = jnp.pad(x1, ((0, B_pad - B), (0, 0)))
        x2 = jnp.pad(x2, ((0, B_pad - B), (0, 0)))

    in_specs = [
        pl.BlockSpec((TB, in_dim), lambda i: (i, 0)),
        pl.BlockSpec((TB, in_dim), lambda i: (i, 0)),
    ]
    for prm in flat_params:
        in_specs.append(pl.BlockSpec(prm.shape, lambda i: (0, 0)))

    # VMEM budget: double-buffered x tiles + out tile + resident params.
    param_bytes = sum(int(np.prod(p.shape)) * p.dtype.itemsize
                      for p in flat_params)
    tile_bytes = (2 * 2 * TB * in_dim + 2 * TB * out_pad_dim) * 4
    vmem_limit = min(64 * 1024 * 1024,
                     max(32 * 1024 * 1024, 2 * param_bytes + 2 * tile_bytes))

    kernel = functools.partial(_mlp_kernel, num_layers=num_layers)

    out_pad = pl.pallas_call(
        kernel,
        out_shape=jax.ShapeDtypeStruct((B_pad, out_pad_dim), jnp.float32),
        grid=(B_pad // TB,),
        in_specs=in_specs,
        out_specs=pl.BlockSpec((TB, out_pad_dim), lambda i: (i, 0)),
        compiler_params=pltpu.CompilerParams(
            dimension_semantics=("parallel",),
            vmem_limit_bytes=int(vmem_limit)),
    )(x1, x2, *flat_params)

    return out_pad[:B, :out_dim]


def reference(x1, x2, weights, biases):
    """Pure numpy reference mirroring the PyTorch forward."""
    x = np.concatenate([x1, x2], axis=1)
    n = len(weights)
    for i in range(n):
        x = x @ weights[i] + biases[i]
        if i != n - 1:
            x = np.maximum(x, 0.0)
        else:
            x = 1.0 / (1.0 + np.exp(-x))
    return x


if __name__ == "__main__":
    in_dim = 32
    hid_dims = [64, 64]
    out_dim = 32
    batch = 8

    key = jax.random.PRNGKey(0)
    dim_seq = [in_dim * 2] + hid_dims + [out_dim]
    weights, biases = [], []
    for i in range(len(dim_seq) - 1):
        d1, d2 = dim_seq[i], dim_seq[i + 1]
        key, kw, kb = jax.random.split(key, 3)
        # kaiming_normal_(nonlinearity='leaky_relu'): gain=sqrt(2/(1+0.01^2)),
        # fan_in = d1.  (Init choice does not affect forward semantics.)
        std = float(np.sqrt(2.0 / (1.0 + 0.01 ** 2)) / np.sqrt(d1))
        weights.append(jax.random.normal(kw, (d1, d2), jnp.float32) * std)
        bound = float(1.0 / np.sqrt(d1))
        biases.append(jax.random.uniform(kb, (d2,), jnp.float32, -bound, bound))

    key, k1, k2 = jax.random.split(key, 3)
    x1 = jax.random.normal(k1, (batch, in_dim), jnp.float32)
    x2 = jax.random.normal(k2, (batch, in_dim), jnp.float32)

    flat_params, n_layers, odim, opad = prepare_params(weights, biases, in_dim)
    out = fc_composer_forward(x1, x2, flat_params, num_layers=n_layers,
                              out_dim=odim, out_pad_dim=opad)
    jax.block_until_ready(out)

    ref = reference(np.asarray(x1), np.asarray(x2),
                    [np.asarray(w) for w in weights],
                    [np.asarray(b) for b in biases])
    np.testing.assert_allclose(np.asarray(out), ref, rtol=1e-5, atol=1e-5)

    print("KERNEL_OK")
</pallas_src>

<mosaic_0001>
module attributes {stable_mosaic.version = 11 : i64} {
  func.func @_mlp_kernel(%arg0: i32, %arg1: memref<8x32xf32, #tpu.memory_space<vmem>>, %arg2: memref<8x32xf32, #tpu.memory_space<vmem>>, %arg3: memref<32x128xf32, #tpu.memory_space<vmem>>, %arg4: memref<32x128xf32, #tpu.memory_space<vmem>>, %arg5: memref<1x128xf32, #tpu.memory_space<vmem>>, %arg6: memref<128x128xf32, #tpu.memory_space<vmem>>, %arg7: memref<1x128xf32, #tpu.memory_space<vmem>>, %arg8: memref<128x128xf32, #tpu.memory_space<vmem>>, %arg9: memref<1x128xf32, #tpu.memory_space<vmem>>, %arg10: memref<8x128xf32, #tpu.memory_space<vmem>>) attributes {dimension_semantics = [#tpu.dimension_semantics<parallel>], iteration_bounds = array<i64: 1>, scalar_prefetch = 0 : i64, scratch_operands = 0 : i64, tpu.core_type = #tpu.core_type<tc>, window_params = [{transform_indices = @transform_0, window_bounds = array<i64: 8, 32>}, {transform_indices = @transform_1, window_bounds = array<i64: 8, 32>}, {pipeline_mode = #tpu.pipeline_mode<synchronous>, transform_indices = @transform_2, window_bounds = array<i64: 32, 128>}, {pipeline_mode = #tpu.pipeline_mode<synchronous>, transform_indices = @transform_3, window_bounds = array<i64: 32, 128>}, {pipeline_mode = #tpu.pipeline_mode<synchronous>, transform_indices = @transform_4, window_bounds = array<i64: 1, 128>}, {pipeline_mode = #tpu.pipeline_mode<synchronous>, transform_indices = @transform_5, window_bounds = array<i64: 128, 128>}, {pipeline_mode = #tpu.pipeline_mode<synchronous>, transform_indices = @transform_6, window_bounds = array<i64: 1, 128>}, {pipeline_mode = #tpu.pipeline_mode<synchronous>, transform_indices = @transform_7, window_bounds = array<i64: 128, 128>}, {pipeline_mode = #tpu.pipeline_mode<synchronous>, transform_indices = @transform_8, window_bounds = array<i64: 1, 128>}, {transform_indices = @transform_9, window_bounds = array<i64: 8, 128>}]} {
    %c0 = arith.constant 0 : index
    %c0_0 = arith.constant 0 : index
    %0 = vector.load %arg1[%c0, %c0_0] : memref<8x32xf32, #tpu.memory_space<vmem>>, vector<8x32xf32>
    %c0_1 = arith.constant 0 : index
    %c0_2 = arith.constant 0 : index
    %1 = vector.load %arg3[%c0_1, %c0_2] : memref<32x128xf32, #tpu.memory_space<vmem>>, vector<32x128xf32>
    %cst = arith.constant dense<0.000000e+00> : vector<8x128xf32>
    %2 = tpu.matmul %0, %1, %cst {dimension_numbers = #tpu.dot_dimension_numbers<[1], [0], [0], [1], [0, 0, 1, 1], [], []>} : vector<8x32xf32>, vector<32x128xf32>, vector<8x128xf32> -> vector<8x128xf32>
    %c0_3 = arith.constant 0 : index
    %c0_4 = arith.constant 0 : index
    %3 = vector.load %arg2[%c0_3, %c0_4] : memref<8x32xf32, #tpu.memory_space<vmem>>, vector<8x32xf32>
    %c0_5 = arith.constant 0 : index
    %c0_6 = arith.constant 0 : index
    %4 = vector.load %arg4[%c0_5, %c0_6] : memref<32x128xf32, #tpu.memory_space<vmem>>, vector<32x128xf32>
    %cst_7 = arith.constant dense<0.000000e+00> : vector<8x128xf32>
    %5 = tpu.matmul %3, %4, %cst_7 {dimension_numbers = #tpu.dot_dimension_numbers<[1], [0], [0], [1], [0, 0, 1, 1], [], []>} : vector<8x32xf32>, vector<32x128xf32>, vector<8x128xf32> -> vector<8x128xf32>
    %6 = arith.addf %2, %5 : vector<8x128xf32>
    %c0_8 = arith.constant 0 : index
    %c0_9 = arith.constant 0 : index
    %7 = vector.load %arg5[%c0_8, %c0_9] : memref<1x128xf32, #tpu.memory_space<vmem>>, vector<1x128xf32>
    %8 = vector.broadcast %7 : vector<1x128xf32> to vector<8x128xf32>
    %9 = arith.addf %6, %8 : vector<8x128xf32>
    %cst_10 = arith.constant 0.000000e+00 : f32
    %10 = vector.broadcast %cst_10 : f32 to vector<8x128xf32>
    %11 = arith.maximumf %9, %10 : vector<8x128xf32>
    %c0_11 = arith.constant 0 : index
    %c0_12 = arith.constant 0 : index
    %12 = vector.load %arg6[%c0_11, %c0_12] : memref<128x128xf32, #tpu.memory_space<vmem>>, vector<128x128xf32>
    %cst_13 = arith.constant dense<0.000000e+00> : vector<8x128xf32>
    %13 = tpu.matmul %11, %12, %cst_13 {dimension_numbers = #tpu.dot_dimension_numbers<[1], [0], [0], [1], [0, 0, 1, 1], [], []>} : vector<8x128xf32>, vector<128x128xf32>, vector<8x128xf32> -> vector<8x128xf32>
    %c0_14 = arith.constant 0 : index
    %c0_15 = arith.constant 0 : index
    %14 = vector.load %arg7[%c0_14, %c0_15] : memref<1x128xf32, #tpu.memory_space<vmem>>, vector<1x128xf32>
    %15 = vector.broadcast %14 : vector<1x128xf32> to vector<8x128xf32>
    %16 = arith.addf %13, %15 : vector<8x128xf32>
    %cst_16 = arith.constant 0.000000e+00 : f32
    %17 = vector.broadcast %cst_16 : f32 to vector<8x128xf32>
    %18 = arith.maximumf %16, %17 : vector<8x128xf32>
    %c0_17 = arith.constant 0 : index
    %c0_18 = arith.constant 0 : index
    %19 = vector.load %arg8[%c0_17, %c0_18] : memref<128x128xf32, #tpu.memory_space<vmem>>, vector<128x128xf32>
    %cst_19 = arith.constant dense<0.000000e+00> : vector<8x128xf32>
    %20 = tpu.matmul %18, %19, %cst_19 {dimension_numbers = #tpu.dot_dimension_numbers<[1], [0], [0], [1], [0, 0, 1, 1], [], []>} : vector<8x128xf32>, vector<128x128xf32>, vector<8x128xf32> -> vector<8x128xf32>
    %c0_20 = arith.constant 0 : index
    %c0_21 = arith.constant 0 : index
    %21 = vector.load %arg9[%c0_20, %c0_21] : memref<1x128xf32, #tpu.memory_space<vmem>>, vector<1x128xf32>
    %22 = vector.broadcast %21 : vector<1x128xf32> to vector<8x128xf32>
    %23 = arith.addf %20, %22 : vector<8x128xf32>
    %cst_22 = arith.constant 0.000000e+00 : f32
    %24 = vector.broadcast %cst_22 : f32 to vector<8x128xf32>
    %25 = arith.subf %24, %23 : vector<8x128xf32>
    %26 = math.exp %25 : vector<8x128xf32>
    %cst_23 = arith.constant 1.000000e+00 : f32
    %27 = vector.broadcast %cst_23 : f32 to vector<8x128xf32>
    %28 = arith.addf %27, %26 : vector<8x128xf32>
    %cst_24 = arith.constant 1.000000e+00 : f32
    %29 = vector.broadcast %cst_24 : f32 to vector<8x128xf32>
    %30 = arith.divf %29, %28 : vector<8x128xf32>
    %c0_25 = arith.constant 0 : index
    %c0_26 = arith.constant 0 : index
    %31 = vector.load %arg10[%c0_25, %c0_26] : memref<8x128xf32, #tpu.memory_space<vmem>>, vector<8x128xf32>
    tpu.vector_store %arg10[%c0_25, %c0_26], %30 {strides = array<i32>} : memref<8x128xf32, #tpu.memory_space<vmem>>, vector<8x128xf32>,
    return
  }
  func.func @transform_0(%arg0: i32) -> (i32, i32) {
    %c0_i32 = arith.constant 0 : i32
    %c0_i32_0 = arith.constant 0 : i32
    return %arg0, %c0_i32 : i32, i32
  }
  func.func @transform_1(%arg0: i32) -> (i32, i32) {
    %c0_i32 = arith.constant 0 : i32
    %c0_i32_0 = arith.constant 0 : i32
    return %arg0, %c0_i32 : i32, i32
  }
  func.func @transform_2(%arg0: i32) -> (i32, i32) {
    %c0_i32 = arith.constant 0 : i32
    %c0_i32_0 = arith.constant 0 : i32
    %c0_i32_1 = arith.constant 0 : i32
    return %c0_i32, %c0_i32_0 : i32, i32
  }
  func.func @transform_3(%arg0: i32) -> (i32, i32) {
    %c0_i32 = arith.constant 0 : i32
    %c0_i32_0 = arith.constant 0 : i32
    %c0_i32_1 = arith.constant 0 : i32
    return %c0_i32, %c0_i32_0 : i32, i32
  }
  func.func @transform_4(%arg0: i32) -> (i32, i32) {
    %c0_i32 = arith.constant 0 : i32
    %c0_i32_0 = arith.constant 0 : i32
    %c0_i32_1 = arith.constant 0 : i32
    return %c0_i32, %c0_i32_0 : i32, i32
  }
  func.func @transform_5(%arg0: i32) -> (i32, i32) {
    %c0_i32 = arith.constant 0 : i32
    %c0_i32_0 = arith.constant 0 : i32
    %c0_i32_1 = arith.constant 0 : i32
    return %c0_i32, %c0_i32_0 : i32, i32
  }
  func.func @transform_6(%arg0: i32) -> (i32, i32) {
    %c0_i32 = arith.constant 0 : i32
    %c0_i32_0 = arith.constant 0 : i32
    %c0_i32_1 = arith.constant 0 : i32
    return %c0_i32, %c0_i32_0 : i32, i32
  }
  func.func @transform_7(%arg0: i32) -> (i32, i32) {
    %c0_i32 = arith.constant 0 : i32
    %c0_i32_0 = arith.constant 0 : i32
    %c0_i32_1 = arith.constant 0 : i32
    return %c0_i32, %c0_i32_0 : i32, i32
  }
  func.func @transform_8(%arg0: i32) -> (i32, i32) {
    %c0_i32 = arith.constant 0 : i32
    %c0_i32_0 = arith.constant 0 : i32
    %c0_i32_1 = arith.constant 0 : i32
    return %c0_i32, %c0_i32_0 : i32, i32
  }
  func.func @transform_9(%arg0: i32) -> (i32, i32) {
    %c0_i32 = arith.constant 0 : i32
    %c0_i32_0 = arith.constant 0 : i32
    return %arg0, %c0_i32 : i32, i32
  }
}

</mosaic_0001>

<bundles_post_ra>
// kernel: fc_composer_forward.1
= control target key start
LH: loop header
LB: loop body
LE: loop exit
PB: predicated region body
PF: predicated region fallthrough
CT: control target
= control target key end

     0   :  { %14 = vsyncpa [#allocation3], 0  ;;  %s946_s0 = inlined_call_operand.hbm [shape: f32[8,32], index: 0, kind: input, shape index: {}]   ;;  %s947_s1 = inlined_call_operand.hbm [shape: f32[8,32], index: 1, kind: input, shape index: {}]   ;;  %s948_s2 = inlined_call_operand.hbm [shape: f32[32,128], index: 2, kind: input, shape index: {}]   ;;  %s949_s3 = inlined_call_operand.hbm [shape: f32[32,128], index: 3, kind: input, shape index: {}]   ;;  %s950_s4 = inlined_call_operand.vmem [shape: f32[1,128], index: 4, kind: input, shape index: {}]   ;;  %s951_s5 = inlined_call_operand.hbm [shape: f32[128,128], index: 5, kind: input, shape index: {}]   ;;  %s952_s6 = inlined_call_operand.vmem [shape: f32[1,128], index: 6, kind: input, shape index: {}]   ;;  %s953_s7 = inlined_call_operand.hbm [shape: f32[128,128], index: 7, kind: input, shape index: {}]   ;;  %s954_s8 = inlined_call_operand.vmem [shape: f32[1,128], index: 8, kind: input, shape index: {}]   ;;  %s955_s9 = inlined_call_operand.hbm [shape: f32[8,128], index: 9, kind: output, shape index: {}]  }
   0x1   :  { %15 = vsyncpa [#allocation6], 0 }
   0x2   :  { %16 = vsyncpa [#allocation9], 0 }
   0x3   :  { %17 = vsyncpa [#allocation12], 0 }
   0x4   :  { %18 = vsyncpa [#allocation4], 0  ;;  %s795_s30 = smov [#allocation5]  }
   0x5   :  { %s35_s10 = sshll.u32 %s795_s30, 4  ;;  %s36_s10 = int_to_ptr.vmem [resolvable:$true] %s35_s10 }
   0x6   :  { %s653_s11 = scalar_lea.vmem %s36_s10, 128  ;;  %p658_p1 = scmp.lt.s32.totalorder %s36_s10, %s36_s10 }
   0x7   :  { %p654_p0 = scmp.ne.s32.totalorder %s36_s10, %s653_s11  ;;  %p659_p2 = scmp.lt.s32.totalorder %s653_s11, %s653_s11 }
   0x9   :  { %p660_p3 = por %p659_p2, %p658_p1 }
   0xb   :  { %p661_p4 = pnand %p660_p3, %p654_p0 }
   0xd   :  { %664 = shalt.err (!%p661_p4)
}
   0xe   :  { %38 = dma.hbm_to_vmem [thread:$0]  %s947_s1, 128, %s36_s10, [#allocation6]  }
   0xf   :  { %s796_s14 = smov [#allocation8]   ;;  %s797_s16 = smov [#allocation2]  }
  0x10   :  { %s56_s15 = sshll.u32 %s796_s14, 4  ;;  %s25_s17 = sshll.u32 %s797_s16, 4  ;;  %s57_s15 = int_to_ptr.vmem [resolvable:$true] %s56_s15  ;;  %s26_s17 = int_to_ptr.vmem [resolvable:$true] %s25_s17 }
  0x11   :  { %s673_s18 = scalar_lea.vmem %s57_s15, 512  ;;  %p678_p6 = scmp.lt.s32.totalorder %s57_s15, %s57_s15 }
  0x12   :  { %p674_p5 = scmp.ne.s32.totalorder %s57_s15, %s673_s18  ;;  %p679_p7 = scmp.lt.s32.totalorder %s673_s18, %s673_s18 }
  0x14   :  { %p680_p8 = por %p679_p7, %p678_p6 }
  0x16   :  { %p681_p9 = pnand %p680_p8, %p674_p5 }
  0x18   :  { %684 = shalt.err (!%p681_p9)
}
  0x19   :  { %s798_s19 = smov 128   ;;  %s799_s20 = smov 8  }
  0x1a   :  { %62 = dma.hbm_to_vmem [thread:$0]  %s949_s3, 512, %s57_s15, [#allocation9], %s798_s19, %s798_s19, %s799_s20  }
  0x1b   :  { %s693_s1 = scalar_lea.vmem %s26_s17, 128  ;;  %p698_p11 = scmp.lt.s32.totalorder %s26_s17, %s26_s17 }
  0x1c   :  { %p694_p10 = scmp.ne.s32.totalorder %s26_s17, %s693_s1  ;;  %p699_p12 = scmp.lt.s32.totalorder %s693_s1, %s693_s1 }
  0x1e   :  { %p700_p13 = por %p699_p12, %p698_p11 }
  0x20   :  { %p701_p0 = pnand %p700_p13, %p694_p10 }
  0x22   :  { %704 = shalt.err (!%p701_p0)
}
  0x23   :  { %28 = dma.hbm_to_vmem [thread:$0]  %s946_s0, 128, %s26_s17, [#allocation3]  }
  0x24   :  { %s800_s25 = smov [#allocation7]   ;;  %s801_s27 = smov [#allocation10]  }
  0x25   :  { %s44_s26 = sshll.u32 %s800_s25, 4  ;;  %s70_s28 = sshll.u32 %s801_s27, 4  ;;  %s45_s26 = int_to_ptr.vmem [resolvable:$true] %s44_s26  ;;  %s71_s28 = int_to_ptr.vmem [resolvable:$true] %s70_s28 }
  0x26   :  { %s713_s29 = scalar_lea.vmem %s45_s26, 512  ;;  %p718_p2 = scmp.lt.s32.totalorder %s45_s26, %s45_s26 }
  0x27   :  { %p714_p1 = scmp.ne.s32.totalorder %s45_s26, %s713_s29  ;;  %p719_p3 = scmp.lt.s32.totalorder %s713_s29, %s713_s29 }
  0x29   :  { %p720_p4 = por %p719_p3, %p718_p2 }
  0x2b   :  { %p721_p5 = pnand %p720_p4, %p714_p1 }
  0x2d   :  { %724 = shalt.err (!%p721_p5)
}
  0x2e   :  { %50 = dma.hbm_to_vmem [thread:$0]  %s948_s2, 512, %s45_s26, [#allocation6], %s798_s19, %s798_s19, %s799_s20  }
  0x2f   :  { %s733_s0 = scalar_lea.vmem %s71_s28, 2048  ;;  %p738_p7 = scmp.lt.s32.totalorder %s71_s28, %s71_s28 }
  0x30   :  { %p734_p6 = scmp.ne.s32.totalorder %s71_s28, %s733_s0  ;;  %p739_p8 = scmp.lt.s32.totalorder %s733_s0, %s733_s0 }
  0x32   :  { %p740_p9 = por %p739_p8, %p738_p7 }
  0x34   :  { %p741_p10 = pnand %p740_p9, %p734_p6 }
  0x36   :  { %744 = shalt.err (!%p741_p10)
}
  0x37   :  { %76 = dma.hbm_to_vmem [thread:$0]  %s951_s5, 2048, %s71_s28, [#allocation9], %s798_s19, %s798_s19, %s799_s20  }
  0x38   :  { %s802_s12 = smov [#allocation11]  }
  0x39   :  { %s84_s13 = sshll.u32 %s802_s12, 4  ;;  %s85_s13 = int_to_ptr.vmem [resolvable:$true] %s84_s13 }
  0x3a   :  { %s753_s14 = scalar_lea.vmem %s85_s13, 2048  ;;  %p758_p12 = scmp.lt.s32.totalorder %s85_s13, %s85_s13 }
  0x3b   :  { %p754_p11 = scmp.ne.s32.totalorder %s85_s13, %s753_s14  ;;  %p759_p13 = scmp.lt.s32.totalorder %s753_s14, %s753_s14 }
  0x3d   :  { %p760_p0 = por %p759_p13, %p758_p12 }
  0x3f   :  { %p761_p1 = pnand %p760_p0, %p754_p11 }
  0x41   :  { %764 = shalt.err (!%p761_p1)
}
  0x42   :  { %90 = dma.hbm_to_vmem [thread:$0]  %s953_s7, 2048, %s85_s13, [#allocation12], %s798_s19, %s798_s19, %s799_s20  }
  0x43   :  { %785 = dma.done.wait [#allocation3], 128  }
  0x44   :  { %786 = vsyncadd [#allocation3], 4294967168 }
  0x45   :  { %787 = dma.done.wait [#allocation6], 640  }
  0x46   :  { %788 = vsyncadd [#allocation6], 4294966656 }
  0x47   :  { %789 = dma.done.wait [#allocation9], 2560  }
  0x48   :  { %790 = vsyncadd [#allocation9], 4294964736 }
  0x49   :  { %791 = dma.done.wait [#allocation12], 2048  }
  0x4a   :  { %792 = vsyncadd [#allocation12], 4294965248  ;;  %v803_v0 = vmov 0.0   ;;  %vm804_vm0 = vmmov 0   ;;  %v120_v1 = vld [vmem:[#allocation8 + $0x18] sm:$0xff]  ;;  %v119_v3 = vld [vmem:[#allocation8 + $0x10] sm:$0xff] }
  0x4b   :  { %538 = vmatprep.subr.mxu0 %v803_v0  ;;  %549 = vmatprep.subr.mxu1 %v803_v0  ;;  %v115_v2 = vld [vmem:[#allocation7 + $0x18] sm:$0xff]  ;;  %v114_v4 = vld [vmem:[#allocation7 + $0x10] sm:$0xff]  ;;  %v118_v5 = vld [vmem:[#allocation8 + $0x8] sm:$0xff]  ;;  %vm121_vm1 = vcmask 261120   ;;  %s805_s19 = smov [#allocation13]  }
  0x4c   :  { %546 = vmatprep.mubr.msk.f32.mxu0 %vm804_vm0, %v803_v0  ;;  %557 = vmatprep.mubr.msk.f32.mxu1 %vm804_vm0, %v803_v0  ;;  %v113_v6 = vld [vmem:[#allocation7 + $0x8] sm:$0xff]  ;;  %v117_v7 = vld [vmem:[#allocation8] sm:$0xff]  ;;  %v116_v9 = vld [vmem:[#allocation5] sm:$0xff] }
  0x4d   :  { %539 = vmatpush3.msra.mxu0 %v120_v1  ;;  %550 = vmatpush3.msra.mxu1 %v115_v2  ;;  %v112_v8 = vld [vmem:[#allocation7] sm:$0xff]  ;;  %v111_v10 = vld [vmem:[#allocation2] sm:$0xff]  ;;  %v292_v11 = vld [vmem:[#allocation10 + $0x78] sm:$0xff] }
  0x4e   :  { %540 = vmatprep.subr.mxu0 %v803_v0  ;;  %551 = vmatprep.subr.mxu1 %v803_v0  ;;  %v291_v12 = vld [vmem:[#allocation10 + $0x70] sm:$0xff]  ;;  %v290_v13 = vld [vmem:[#allocation10 + $0x68] sm:$0xff]  ;;  %v289_v14 = vld [vmem:[#allocation10 + $0x60] sm:$0xff] }
  0x4f   :  { %541 = vmatpush3.msra.mxu0 %v119_v3  ;;  %552 = vmatpush3.msra.mxu1 %v114_v4  ;;  %v288_v15 = vld [vmem:[#allocation10 + $0x58] sm:$0xff]  ;;  %v287_v16 = vld [vmem:[#allocation10 + $0x50] sm:$0xff]  ;;  %v286_v17 = vld [vmem:[#allocation10 + $0x48] sm:$0xff] }
  0x50   :  { %542 = vmatprep.subr.mxu0 %v803_v0  ;;  %553 = vmatprep.subr.mxu1 %v803_v0  ;;  %v285_v18 = vld [vmem:[#allocation10 + $0x40] sm:$0xff]  ;;  %v284_v19 = vld [vmem:[#allocation10 + $0x38] sm:$0xff]  ;;  %v283_v20 = vld [vmem:[#allocation10 + $0x30] sm:$0xff] }
  0x51   :  { %543 = vmatpush3.msra.mxu0 %v118_v5  ;;  %554 = vmatpush3.msra.mxu1 %v113_v6  ;;  %v282_v21 = vld [vmem:[#allocation10 + $0x28] sm:$0xff]  ;;  %v281_v22 = vld [vmem:[#allocation10 + $0x20] sm:$0xff]  ;;  %v280_v23 = vld [vmem:[#allocation10 + $0x18] sm:$0xff] }
  0x52   :  { %544 = vmatprep.subr.mxu0 %v803_v0  ;;  %555 = vmatprep.subr.mxu1 %v803_v0  ;;  %v279_v24 = vld [vmem:[#allocation10 + $0x10] sm:$0xff]  ;;  %v278_v25 = vld [vmem:[#allocation10 + $0x8] sm:$0xff]  ;;  %v277_v26 = vld [vmem:[#allocation10] sm:$0xff] }
  0x53   :  { %545 = vmatpush3.msra.mxu0 %v117_v7  ;;  %556 = vmatpush3.msra.mxu1 %v112_v8  ;;  %v386_v27 = vld [vmem:[#allocation11 + $0x78] sm:$0xff]  ;;  %v385_v28 = vld [vmem:[#allocation11 + $0x70] sm:$0xff]  ;;  %v384_v29 = vld [vmem:[#allocation11 + $0x68] sm:$0xff] }
  0x54   :  { %547 = vmatmul.mubr.msk.f32.vlgmr.msra.gmra.mxu0 %vm121_vm1, %v116_v9  ;;  %558 = vmatmul.mubr.msk.f32.vlgmr.msra.gmra.mxu1 %vm121_vm1, %v111_v10  ;;  %v383_v30 = vld [vmem:[#allocation11 + $0x60] sm:$0xff]  ;;  %v382_v31 = vld [vmem:[#allocation11 + $0x58] sm:$0xff]  ;;  %v381_v32 = vld [vmem:[#allocation11 + $0x50] sm:$0xff] }
  0x55   :  { %560 = vmatprep.subr.mxu0 %v803_v0  ;;  %592 = vmatprep.mubr.msk.f32.mxu0 %vm804_vm0, %v803_v0  ;;  %v380_v33 = vld [vmem:[#allocation11 + $0x48] sm:$0xff]  ;;  %v379_v34 = vld [vmem:[#allocation11 + $0x40] sm:$0xff]  ;;  %v378_v35 = vld [vmem:[#allocation11 + $0x38] sm:$0xff] }
  0x56   :  { %561 = vmatpush3.msra.mxu0 %v292_v11  ;;  %595 = vmatprep.subr.mxu1 %v803_v0  ;;  %v377_v36 = vld [vmem:[#allocation11 + $0x30] sm:$0xff]  ;;  %v376_v37 = vld [vmem:[#allocation11 + $0x28] sm:$0xff]  ;;  %v375_v38 = vld [vmem:[#allocation11 + $0x20] sm:$0xff] }
  0x57   :  { %562 = vmatprep.subr.mxu0 %v803_v0  ;;  %627 = vmatprep.mubr.msk.f32.mxu1 %vm804_vm0, %v803_v0  ;;  %v374_v39 = vld [vmem:[#allocation11 + $0x18] sm:$0xff]  ;;  %v491_v42 = vld [vmem:[%s950_s4] ss:$0 sm:$0xff]  ;;  %v372_v49 = vld [vmem:[#allocation11 + $0x8] sm:$0xff] }
  0x58   :  { %563 = vmatpush3.msra.mxu0 %v291_v12  ;;  %596 = vmatpush3.msra.mxu1 %v386_v27  ;;  %v373_v48 = vld [vmem:[#allocation11 + $0x10] sm:$0xff]  ;;  %v371_v50 = vld [vmem:[#allocation11] sm:$0xff] }
  0x59   :  { %564 = vmatprep.subr.mxu0 %v803_v0  ;;  %597 = vmatprep.subr.mxu1 %v803_v0  ;;  %v492_v51 = vld [vmem:[%s952_s6] ss:$0 sm:$0xff]  ;;  %s477_s6 = sshll.u32 %s805_s19, 4  ;;  %s478_s6 = int_to_ptr.vmem [resolvable:$true] %s477_s6 }
  0x5a   :  { %565 = vmatpush3.msra.mxu0 %v290_v13  ;;  %598 = vmatpush3.msra.mxu1 %v385_v28  ;;  %v493_v56 = vld [vmem:[%s954_s8] ss:$0 sm:$0xff]  ;;  %s765_s20 = scalar_lea.vmem %s478_s6, 128  ;;  %p770_p3 = scmp.lt.s32.totalorder %s478_s6, %s478_s6 }
  0x5b   :  { %566 = vmatprep.subr.mxu0 %v803_v0  ;;  %599 = vmatprep.subr.mxu1 %v803_v0  ;;  %p766_p2 = scmp.ne.s32.totalorder %s478_s6, %s765_s20  ;;  %p771_p4 = scmp.lt.s32.totalorder %s765_s20, %s765_s20 }
  0x5c   :  { %567 = vmatpush3.msra.mxu0 %v289_v14  ;;  %600 = vmatpush3.msra.mxu1 %v384_v29 }
  0x5d   :  { %568 = vmatprep.subr.mxu0 %v803_v0  ;;  %601 = vmatprep.subr.mxu1 %v803_v0  ;;  %p772_p5 = por %p771_p4, %p770_p3 }
  0x5e   :  { %569 = vmatpush3.msra.mxu0 %v288_v15  ;;  %602 = vmatpush3.msra.mxu1 %v383_v30 }
  0x5f   :  { %570 = vmatprep.subr.mxu0 %v803_v0  ;;  %603 = vmatprep.subr.mxu1 %v803_v0  ;;  %p773_p6 = pnand %p772_p5, %p766_p2 }
  0x60   :  { %571 = vmatpush3.msra.mxu0 %v287_v16  ;;  %604 = vmatpush3.msra.mxu1 %v382_v31 }
  0x61   :  { %572 = vmatprep.subr.mxu0 %v803_v0  ;;  %605 = vmatprep.subr.mxu1 %v803_v0 }
  0x62   :  { %573 = vmatpush3.msra.mxu0 %v286_v17  ;;  %606 = vmatpush3.msra.mxu1 %v381_v32 }
  0x63   :  { %574 = vmatprep.subr.mxu0 %v803_v0  ;;  %607 = vmatprep.subr.mxu1 %v803_v0 }
  0x64   :  { %575 = vmatpush3.msra.mxu0 %v285_v18  ;;  %608 = vmatpush3.msra.mxu1 %v380_v33 }
  0x65   :  { %576 = vmatprep.subr.mxu0 %v803_v0  ;;  %609 = vmatprep.subr.mxu1 %v803_v0 }
  0x66   :  { %577 = vmatpush3.msra.mxu0 %v284_v19  ;;  %610 = vmatpush3.msra.mxu1 %v379_v34 }
  0x67   :  { %578 = vmatprep.subr.mxu0 %v803_v0  ;;  %611 = vmatprep.subr.mxu1 %v803_v0 }
  0x68   :  { %579 = vmatpush3.msra.mxu0 %v283_v20  ;;  %612 = vmatpush3.msra.mxu1 %v378_v35 }
  0x69   :  { %580 = vmatprep.subr.mxu0 %v803_v0  ;;  %613 = vmatprep.subr.mxu1 %v803_v0 }
  0x6a   :  { %581 = vmatpush3.msra.mxu0 %v282_v21  ;;  %614 = vmatpush3.msra.mxu1 %v377_v36 }
  0x6b   :  { %582 = vmatprep.subr.mxu0 %v803_v0  ;;  %615 = vmatprep.subr.mxu1 %v803_v0 }
  0x6c   :  { %583 = vmatpush3.msra.mxu0 %v281_v22  ;;  %616 = vmatpush3.msra.mxu1 %v376_v37 }
  0x6d   :  { %584 = vmatprep.subr.mxu0 %v803_v0  ;;  %617 = vmatprep.subr.mxu1 %v803_v0 }
  0x6e   :  { %585 = vmatpush3.msra.mxu0 %v280_v23  ;;  %618 = vmatpush3.msra.mxu1 %v375_v38 }
  0x6f   :  { %586 = vmatprep.subr.mxu0 %v803_v0  ;;  %619 = vmatprep.subr.mxu1 %v803_v0 }
  0x70   :  { %587 = vmatpush3.msra.mxu0 %v279_v24  ;;  %620 = vmatpush3.msra.mxu1 %v374_v39 }
  0x71   :  { %588 = vmatprep.subr.mxu0 %v803_v0  ;;  %621 = vmatprep.subr.mxu1 %v803_v0 }
  0x72   :  { %589 = vmatpush3.msra.mxu0 %v278_v25  ;;  %622 = vmatpush3.msra.mxu1 %v373_v48 }
  0x73   :  { %590 = vmatprep.subr.mxu0 %v803_v0  ;;  %623 = vmatprep.subr.mxu1 %v803_v0 }
  0x74   :  { %591 = vmatpush3.msra.mxu0 %v277_v26  ;;  %624 = vmatpush3.msra.mxu1 %v372_v49 }
  0x75   :  { %625 = vmatprep.subr.mxu1 %v803_v0 }
  0x76   :  { %626 = vmatpush3.msra.mxu1 %v371_v50 }
 0x114   :  { %v191_v40 = vpop.f32.mrf.mxu0  ;;  %v264_v41 = vpop.f32.mrf.mxu1 }
 0x115   :  { %v265_v43 = vadd.f32 %v264_v41, %v191_v40 }
 0x116   :  { %v548_v44 = vpop.f32.mrf.mxu0  ;;  %v559_v45 = vpop.f32.mrf.mxu1 }
 0x117   :  { %v275_v46 = vadd.f32 %v491_v42, %v265_v43 }
 0x119   :  { %v276_v47 = vmax.f32 %v275_v46, 0.0 }
 0x11b   :  { %593 = vmatmul.mubr.f32.vlgmr.msra.gmra.mxu0 %v276_v47 }
 0x1db   :  { %v366_v52 = vpop.f32.mrf.mxu0 }
 0x1dc   :  { %v367_v53 = vadd.f32 %v492_v51, %v366_v52 }
 0x1dd   :  { %v594_v54 = vpop.f32.mrf.mxu0 }
 0x1de   :  { %v370_v55 = vmax.f32 %v367_v53, 0.0 }
 0x1e0   :  { %628 = vmatmul.mubr.f32.vlgmr.msra.gmra.mxu1 %v370_v55 }
 0x2a0   :  { %v460_v57 = vpop.f32.mrf.mxu1 }
 0x2a1   :  { %v461_v58 = vadd.f32 %v493_v56, %v460_v57 }
 0x2a2   :  { %v629_v59 = vpop.f32.mrf.mxu1 }
 0x2a3   :  { %v464_v60 = vsub.f32 0.0, %v461_v58 }
 0x2a5   :  { %v465_v61 = vmul.f32 1.442695, %v464_v60 }
 0x2a7   :  { %641 = vpow2.f32 %v465_v61 }
 0x2b4   :  { %v642_v62 = vpop.eup %641 }
 0x2b5   :  { %v467_v63 = vadd.f32 1.0, %v642_v62 }
 0x2b7   :  { %643 = vrcp.f32 %v467_v63 }
 0x2c4   :  { %v644_v0 = vpop.eup %643 }
 0x2c5   :  { %470 = vst [vmem:[#allocation13] sm:$0xff] %v644_v0 }
 0x2c6   :  { %776 = shalt.err (!%p773_p6)
}
 0x2c7   :  { %480 = dma.vmem_to_hbm [thread:$0]  %s478_s6, 128, %s955_s9, [#allocation4]  }
 0x2c8   :  { %793 = dma.done.wait [#allocation4], 128  }
 0x2c9   :  { %794 = vsyncadd [#allocation4], 4294967168 }
 0x2ca   :  { %484 = vsyncpa [#allocation3], 1 }
 0x2cb   :  { %485 = vsyncpa [#allocation6], 1 }
 0x2cc   :  { %486 = vsyncpa [#allocation9], 1 }
 0x2cd   :  { %487 = vsyncpa [#allocation12], 1 }
 0x2ce   :  { %488 = vsyncpa [#allocation4], 1 }

</bundles_post_ra>
